<compile_context>
chip_gen: v5e
topology: v5e:2x2
jax: 0.10.0
libtpu: 0.0.40
codegen_flags: <defaults>
</compile_context>

<pallas_src>
import math
import functools

import jax
import jax.numpy as jnp
from jax import lax
from jax.experimental import pallas as pl
from jax.experimental.pallas import tpu as pltpu

LEAKY_SLOPE = 0.01     # nn.LeakyReLU default negative_slope
BN_EPS = 1e-5          # nn.BatchNorm1d default eps
LANE_TARGET = 8192     # lanes per batch block; fits v5e 16MiB scoped VMEM comfortably


def _leaky(x):
    # equivalent to where(x>=0, x, slope*x) for slope < 1, one op cheaper
    return jnp.maximum(x, LEAKY_SLOPE * x)


def _round8(n):
    return -(-n // 8) * 8


def _pad_rows8(a):
    pad = (-a.shape[0]) % 8
    if pad:
        a = jnp.concatenate([a, jnp.zeros((pad,) + a.shape[1:], a.dtype)], axis=0)
    return a


def _bottleneck_kernel(x_ref, wcin_ref, w2_ref, wd_ref, cols_ref, seg_ref, segT_ref,
                       weca_ref, out_ref, *, L, Bt, init1, new1, init2, new2,
                       hidden, out_ch, p_init1, p_new1, offs):
    BL = Bt * L
    x = x_ref[...]                                         # (cin, BL)

    def col(name):
        o, n = offs[name]
        return cols_ref[o:o + n, :]                        # (n, 1) static slice

    # boundary masks for the k=3 / pad=1 depthwise convs; constant cost (no Bt loop)
    lane = lax.broadcasted_iota(jnp.int32, (1, BL), 1)
    pos = lane % L
    left_ok = pos != 0                                     # t-1 stays inside segment
    right_ok = pos != (L - 1)                              # t+1 stays inside segment

    def dw3(y, w3):
        # depthwise conv, k=3, stride=1, zero padding=1 (per flattened batch segment)
        y_m1 = jnp.where(left_ok, pltpu.roll(y, shift=1, axis=1), 0.0)        # y[:, t-1]
        y_p1 = jnp.where(right_ok, pltpu.roll(y, shift=BL - 1, axis=1), 0.0)  # y[:, t+1]
        return w3[:, 0:1] * y_m1 + w3[:, 1:2] * y + w3[:, 2:3] * y_p1

    w1 = wcin_ref[0:init1, :]                              # ghost1 primary 1x1 (folded)
    wpw = wcin_ref[p_init1:p_init1 + out_ch, :]            # shortcut pointwise (folded)
    wd1 = wd_ref[0:new1, :]
    wd2 = wd_ref[p_new1:p_new1 + new2, :]

    # --- GhostModule #1 (channel shuffle + BN scales pre-folded into weights) ---
    y1 = _leaky(jnp.dot(w1, x, preferred_element_type=jnp.float32) + col('b1a'))
    y2 = _leaky(dw3(y1, wd1) + col('b1b'))
    h = jnp.concatenate([y1, y2[:hidden - init1]], axis=0)  # (hidden, BL)

    # --- ECA layer, vectorized over all Bt batch elements of the block ---
    w0, w1c, w2c = weca_ref[0], weca_ref[1], weca_ref[2]    # SMEM scalars
    if Bt == 1:
        pooled = jnp.sum(h, axis=1, keepdims=True) * (1.0 / L)              # (hidden, 1)
    else:
        # seg carries the 1/L scaling -> pooled means, one MXU push
        pooled = jnp.dot(h, seg_ref[...], preferred_element_type=jnp.float32)  # (hidden, Bt)
    zrow = jnp.zeros((1, pooled.shape[1]), jnp.float32)
    p_m1 = jnp.concatenate([zrow, pooled[:hidden - 1]], axis=0)             # pooled[c-1]
    p_p1 = jnp.concatenate([pooled[1:], zrow], axis=0)                      # pooled[c+1]
    gate = jax.nn.sigmoid(w0 * p_m1 + w1c * pooled + w2c * p_p1)            # (hidden, Bt)
    if Bt == 1:
        h = h * gate
    else:
        h = h * jnp.dot(gate, segT_ref[...], preferred_element_type=jnp.float32)

    # --- GhostModule #2 (use_act=False): one merged 1x1 matmul + cheap depthwise ---
    z1 = jnp.dot(w2_ref[0:init2, :], h, preferred_element_type=jnp.float32) + col('b2a')
    z2 = dw3(z1, wd2) + col('b2b')
    z = jnp.concatenate([z1, z2[:out_ch - init2]], axis=0)                  # (out_ch, BL)

    # --- shortcut: depthwise k=1 + pointwise 1x1 (BN folded), single merged dot ---
    rd = _leaky(x * col('dws') + col('bsc1'))                               # (cin, BL)
    r = _leaky(jnp.dot(wpw, rd, preferred_element_type=jnp.float32) + col('bsc2'))

    out_ref[...] = (z + r).astype(out_ref.dtype)            # one lane-dense store


def _pick_bt(b, l):
    # batch-block size: fold batch elements onto the lane axis up to LANE_TARGET
    # lanes per grid step; allow padding B (no exact-divisor requirement); keep at
    # least 2 grid steps when B > 1 so v7x's two TensorCores both get work.
    bt_max = max(1, LANE_TARGET // l) if l < LANE_TARGET else 1
    nblk = -(-b // bt_max)
    if nblk == 1 and b > 1:
        nblk = 2
    bt = -(-b // nblk)
    return bt, nblk


def shuffle_ghost_bottleneck(x, p, *, hidden, out_ch, groups=2):
    b, cin, l = x.shape
    init1, new1 = p['w1'].shape[0], p['wd1'].shape[0]
    init2, new2 = p['w2'].shape[0], p['wd2'].shape[0]
    # ratio=2 ghost modules -> the cheap depthwise op is one-to-one per channel
    assert new1 == init1 and new2 == init2

    bt, nblk = _pick_bt(b, l)
    bl = bt * l
    b_pad = nblk * bt

    # -- fold the channel shuffle (ShuffleBlock, groups=2) into w1's columns --
    perm = [(c % groups) * (cin // groups) + (c // groups) for c in range(cin)]
    inv_perm = [0] * cin
    for c, pc in enumerate(perm):
        inv_perm[pc] = c
    w1 = p['w1'][:, :, 0][:, jnp.array(inv_perm)]

    # -- fold BN scales into the conv weights (host-side constant folding) --
    w1_eff = p['s1a'][:, None] * w1                               # (init1, cin)
    wd1_eff = p['s1b'][:, None] * p['wd1'][:, 0, :]               # (new1, 3)
    w2_eff = p['s2a'][:, None] * p['w2'][:, :, 0]                 # (init2, hidden)
    wd2_eff = p['s2b'][:, None] * p['wd2'][:, 0, :]               # (new2, 3)
    dws = p['wdw_sc'][:, 0, 0] * p['ssc1']                        # (cin,) dw k=1 * BN
    wpw_eff = p['ssc2'][:, None] * p['wpw_sc'][:, :, 0]           # (out_ch, cin)

    # -- pack the tiny resident operands (8-row aligned segments) --
    p_init1, p_new1 = _round8(init1), _round8(new1)
    wcin = jnp.concatenate([_pad_rows8(w1_eff), _pad_rows8(wpw_eff)], axis=0)
    wd = jnp.concatenate([_pad_rows8(wd1_eff), _pad_rows8(wd2_eff)], axis=0)
    w2m = _pad_rows8(w2_eff)

    col_list = [('b1a', p['b1a']), ('b1b', p['b1b']), ('b2a', p['b2a']),
                ('b2b', p['b2b']), ('dws', dws), ('bsc1', p['bsc1']),
                ('bsc2', p['bsc2'])]
    offs, pieces, o = {}, [], 0
    for name, v in col_list:
        vp = _pad_rows8(v.astype(jnp.float32)[:, None])
        offs[name] = (o, v.shape[0])
        pieces.append(vp)
        o += vp.shape[0]
    cols = jnp.concatenate(pieces, axis=0)                        # (N, 1)

    # one-hot batch-segment matrices for the vectorized ECA (pool + gate expand)
    seg_id = jnp.arange(bl, dtype=jnp.int32) // l
    seg = jax.nn.one_hot(seg_id, bt, dtype=jnp.float32) * (1.0 / l)   # (bl, bt)
    segT = jax.nn.one_hot(seg_id, bt, dtype=jnp.float32).T            # (bt, bl)

    weca = p['weca'].reshape(3).astype(jnp.float32)               # ECA k=3 scalars (SMEM)

    # -- pad batch to nblk*bt, flatten each batch block onto the lane axis --
    if b_pad != b:
        x = jnp.concatenate([x, jnp.zeros((b_pad - b, cin, l), x.dtype)], axis=0)
    xf = x.reshape(nblk, bt, cin, l).transpose(0, 2, 1, 3).reshape(nblk, cin, bl)

    mats = [wcin, w2m, wd, cols, seg, segT]

    kernel = functools.partial(
        _bottleneck_kernel, L=l, Bt=bt, init1=init1, new1=new1, init2=init2,
        new2=new2, hidden=hidden, out_ch=out_ch, p_init1=p_init1, p_new1=p_new1,
        offs=offs)

    out = pl.pallas_call(
        kernel,
        out_shape=jax.ShapeDtypeStruct((nblk, out_ch, bl), jnp.float32),
        grid=(nblk,),
        in_specs=[pl.BlockSpec((None, cin, bl), lambda i: (i, 0, 0))]
                + [pl.BlockSpec(m.shape, lambda i: (0, 0)) for m in mats]
                + [pl.BlockSpec(memory_space=pltpu.MemorySpace.SMEM)],
        out_specs=pl.BlockSpec((None, out_ch, bl), lambda i: (i, 0, 0)),
        compiler_params=pltpu.CompilerParams(
            dimension_semantics=("parallel",),
            vmem_limit_bytes=32 * 1024 * 1024),
    )(xf, *mats, weca)

    # un-flatten the batch blocks back to (B, out_ch, L) and drop batch padding
    out = out.reshape(nblk, out_ch, bt, l).transpose(0, 2, 1, 3).reshape(b_pad, out_ch, l)
    return out[:b]


# ----------------------------- parameter init ------------------------------
def init_params(key, cin, hidden, out_ch):
    init1 = math.ceil(hidden / 2); new1 = init1
    init2 = math.ceil(out_ch / 2); new2 = init2
    ks = iter(jax.random.split(key, 13))

    def conv_w(k, shape, fan_in):
        bound = 1.0 / math.sqrt(fan_in)
        return jax.random.uniform(k, shape, jnp.float32, -bound, bound)

    def bn(k, c):  # folded inference-mode BN -> (scale, bias)
        k1, k2, k3, k4 = jax.random.split(k, 4)
        gamma = jax.random.uniform(k1, (c,), jnp.float32, 0.5, 1.5)
        beta = jax.random.uniform(k2, (c,), jnp.float32, -0.2, 0.2)
        mean = jax.random.uniform(k3, (c,), jnp.float32, -0.1, 0.1)
        var = jax.random.uniform(k4, (c,), jnp.float32, 0.5, 1.5)
        scale = gamma / jnp.sqrt(var + BN_EPS)
        return scale, beta - mean * scale

    p = {}
    p['w1'] = conv_w(next(ks), (init1, cin, 1), cin)          # ghost1 primary 1x1
    p['s1a'], p['b1a'] = bn(next(ks), init1)
    p['wd1'] = conv_w(next(ks), (new1, 1, 3), 3)              # ghost1 cheap depthwise k=3
    p['s1b'], p['b1b'] = bn(next(ks), new1)
    p['weca'] = conv_w(next(ks), (1, 1, 3), 3)                # ECA conv
    p['w2'] = conv_w(next(ks), (init2, hidden, 1), hidden)    # ghost2 primary 1x1
    p['s2a'], p['b2a'] = bn(next(ks), init2)
    p['wd2'] = conv_w(next(ks), (new2, 1, 3), 3)              # ghost2 cheap depthwise k=3
    p['s2b'], p['b2b'] = bn(next(ks), new2)
    p['wdw_sc'] = conv_w(next(ks), (cin, 1, 1), 1)            # shortcut depthwise k=1
    p['ssc1'], p['bsc1'] = bn(next(ks), cin)
    p['wpw_sc'] = conv_w(next(ks), (out_ch, cin, 1), cin)     # shortcut pointwise 1x1
    p['ssc2'], p['bsc2'] = bn(next(ks), out_ch)
    return p


# ------------------------ pure-JAX reference (check) ------------------------
def _conv1d(x, w, stride=1, padding=0, groups=1):
    return lax.conv_general_dilated(
        x, w, window_strides=(stride,), padding=[(padding, padding)],
        dimension_numbers=('NCH', 'OIH', 'NCH'), feature_group_count=groups,
        precision=lax.Precision.HIGHEST)


def ref_forward(x, p, *, hidden, out_ch, groups=2):
    b, cin, l = x.shape
    init1 = p['w1'].shape[0]
    init2 = p['w2'].shape[0]
    bn = lambda y, s, bb: y * s[None, :, None] + bb[None, :, None]

    xs = x.reshape(b, groups, cin // groups, l).transpose(0, 2, 1, 3).reshape(b, cin, l)

    y1 = _leaky(bn(_conv1d(xs, p['w1']), p['s1a'], p['b1a']))
    y2 = _leaky(bn(_conv1d(y1, p['wd1'], padding=1, groups=init1), p['s1b'], p['b1b']))
    h = jnp.concatenate([y1, y2], axis=1)[:, :hidden]

    pooled = jnp.mean(h, axis=2, keepdims=True)                     # (b, hidden, 1)
    yc = _conv1d(pooled.reshape(b, 1, hidden), p['weca'], padding=1)
    attn = jax.nn.sigmoid(jnp.transpose(yc, (0, 2, 1)))             # (b, hidden, 1)
    h = h * attn

    z1 = bn(_conv1d(h, p['w2']), p['s2a'], p['b2a'])
    z2 = bn(_conv1d(z1, p['wd2'], padding=1, groups=init2), p['s2b'], p['b2b'])
    z = jnp.concatenate([z1, z2], axis=1)[:, :out_ch]

    r = _leaky(bn(_conv1d(x, p['wdw_sc'], groups=cin), p['ssc1'], p['bsc1']))
    r = _leaky(bn(_conv1d(r, p['wpw_sc']), p['ssc2'], p['bsc2']))
    return z + r


if __name__ == "__main__":
    B, CIN, HIDDEN, COUT, L = 2, 8, 16, 16, 128
    key = jax.random.PRNGKey(0)
    kx, kp = jax.random.split(key)
    x = jax.random.normal(kx, (B, CIN, L), dtype=jnp.float32)
    params = init_params(kp, CIN, HIDDEN, COUT)

    out = shuffle_ghost_bottleneck(x, params, hidden=HIDDEN, out_ch=COUT)
    out = jax.block_until_ready(out)

    ref = ref_forward(x, params, hidden=HIDDEN, out_ch=COUT)
    assert out.shape == (B, COUT, L), out.shape
    err = float(jnp.max(jnp.abs(out - ref)))
    assert err < 2e-3, err
    print("KERNEL_OK")
</pallas_src>

<mosaic_0001>
module attributes {stable_mosaic.version = 11 : i64} {
  func.func @_bottleneck_kernel(%arg0: i32, %arg1: memref<1x8x128xf32, #tpu.memory_space<vmem>>, %arg2: memref<24x8xf32, #tpu.memory_space<vmem>>, %arg3: memref<8x16xf32, #tpu.memory_space<vmem>>, %arg4: memref<16x3xf32, #tpu.memory_space<vmem>>, %arg5: memref<64x1xf32, #tpu.memory_space<vmem>>, %arg6: memref<128x1xf32, #tpu.memory_space<vmem>>, %arg7: memref<1x128xf32, #tpu.memory_space<vmem>>, %arg8: memref<3xf32, #tpu.memory_space<smem>>, %arg9: memref<1x16x128xf32, #tpu.memory_space<vmem>>) attributes {dimension_semantics = [#tpu.dimension_semantics<parallel>], iteration_bounds = array<i64: 2>, scalar_prefetch = 0 : i64, scratch_operands = 0 : i64, tpu.core_type = #tpu.core_type<tc>, window_params = [{transform_indices = @transform_0, window_bounds = array<i64: 1, 8, 128>}, {pipeline_mode = #tpu.pipeline_mode<synchronous>, transform_indices = @transform_1, window_bounds = array<i64: 24, 8>}, {pipeline_mode = #tpu.pipeline_mode<synchronous>, transform_indices = @transform_2, window_bounds = array<i64: 8, 16>}, {pipeline_mode = #tpu.pipeline_mode<synchronous>, transform_indices = @transform_3, window_bounds = array<i64: 16, 3>}, {pipeline_mode = #tpu.pipeline_mode<synchronous>, transform_indices = @transform_4, window_bounds = array<i64: 64, 1>}, {pipeline_mode = #tpu.pipeline_mode<synchronous>, transform_indices = @transform_5, window_bounds = array<i64: 128, 1>}, {pipeline_mode = #tpu.pipeline_mode<synchronous>, transform_indices = @transform_6, window_bounds = array<i64: 1, 128>}, {transform_indices = @transform_7, window_bounds = array<i64: 3>}, {transform_indices = @transform_8, window_bounds = array<i64: 1, 16, 128>}]} {
    %c0 = arith.constant 0 : index
    %c0_0 = arith.constant 0 : index
    %c0_1 = arith.constant 0 : index
    %0 = vector.load %arg1[%c0, %c0_0, %c0_1] : memref<1x8x128xf32, #tpu.memory_space<vmem>>, vector<1x8x128xf32>
    %1 = vector.shape_cast %0 : vector<1x8x128xf32> to vector<8x128xf32>
    %2 = tpu.iota {dimensions = array<i32: 1>} : vector<1x128xi32>
    %c128_i32 = arith.constant 128 : i32
    %c0_i32 = arith.constant 0 : i32
    %3 = arith.cmpi eq, %c128_i32, %c0_i32 : i32
    %c1_i32 = arith.constant 1 : i32
    %4 = arith.select %3, %c1_i32, %c128_i32 : i32
    %5 = vector.broadcast %4 : i32 to vector<1x128xi32>
    %6 = arith.remsi %2, %5 : vector<1x128xi32>
    %c0_i32_2 = arith.constant 0 : i32
    %7 = vector.broadcast %c0_i32_2 : i32 to vector<1x128xi32>
    %8 = arith.cmpi ne, %6, %7 : vector<1x128xi32>
    %c0_i32_3 = arith.constant 0 : i32
    %9 = vector.broadcast %c0_i32_3 : i32 to vector<1x128xi32>
    %10 = arith.cmpi slt, %6, %9 : vector<1x128xi32>
    %c0_i32_4 = arith.constant 0 : i32
    %11 = arith.cmpi slt, %4, %c0_i32_4 : i32
    %12 = vector.broadcast %11 : i1 to vector<1x128xi1>
    %13 = vector.broadcast %12 : vector<1x128xi1> to vector<1x128xi1>
    %14 = arith.xori %10, %13 : vector<1x128xi1>
    %15 = arith.andi %14, %8 : vector<1x128xi1>
    %16 = vector.broadcast %4 : i32 to vector<1x128xi32>
    %17 = arith.addi %6, %16 : vector<1x128xi32>
    %18 = arith.select %15, %17, %6 : vector<1x128xi1>, vector<1x128xi32>
    %c0_i32_5 = arith.constant 0 : i32
    %19 = vector.broadcast %c0_i32_5 : i32 to vector<1x128xi32>
    %20 = arith.cmpi ne, %18, %19 : vector<1x128xi32>
    %c127_i32 = arith.constant 127 : i32
    %21 = vector.broadcast %c127_i32 : i32 to vector<1x128xi32>
    %22 = arith.cmpi ne, %18, %21 : vector<1x128xi32>
    %c0_6 = arith.constant 0 : index
    %c0_7 = arith.constant 0 : index
    %23 = vector.load %arg2[%c0_6, %c0_7] : memref<24x8xf32, #tpu.memory_space<vmem>>, vector<8x8xf32>
    %c8 = arith.constant 8 : index
    %c0_8 = arith.constant 0 : index
    %24 = vector.load %arg2[%c8, %c0_8] : memref<24x8xf32, #tpu.memory_space<vmem>>, vector<16x8xf32>
    %c0_9 = arith.constant 0 : index
    %c0_10 = arith.constant 0 : index
    %25 = vector.load %arg4[%c0_9, %c0_10] : memref<16x3xf32, #tpu.memory_space<vmem>>, vector<8x3xf32>
    %c8_11 = arith.constant 8 : index
    %c0_12 = arith.constant 0 : index
    %26 = vector.load %arg4[%c8_11, %c0_12] : memref<16x3xf32, #tpu.memory_space<vmem>>, vector<8x3xf32>
    %cst = arith.constant dense<0.000000e+00> : vector<8x128xf32>
    %27 = tpu.matmul %23, %1, %cst {dimension_numbers = #tpu.dot_dimension_numbers<[1], [0], [0], [1], [0, 0, 1, 1], [], []>} : vector<8x8xf32>, vector<8x128xf32>, vector<8x128xf32> -> vector<8x128xf32>
    %c0_13 = arith.constant 0 : index
    %c0_14 = arith.constant 0 : index
    %28 = vector.load %arg5[%c0_13, %c0_14] : memref<64x1xf32, #tpu.memory_space<vmem>>, vector<8x1xf32>
    %29 = vector.broadcast %28 : vector<8x1xf32> to vector<8x128xf32>
    %30 = arith.addf %27, %29 : vector<8x128xf32>
    %cst_15 = arith.constant 0.00999999977 : f32
    %31 = vector.broadcast %cst_15 : f32 to vector<8x128xf32>
    %32 = arith.mulf %31, %30 : vector<8x128xf32>
    %33 = arith.maximumf %30, %32 : vector<8x128xf32>
    %c1_i32_16 = arith.constant 1 : i32
    %34 = tpu.dynamic_rotate %33 by %c1_i32_16 dim 1 : vector<8x128xf32>, i32 -> vector<8x128xf32>
    %cst_17 = arith.constant 0.000000e+00 : f32
    %35 = vector.shape_cast %20 : vector<1x128xi1> to vector<1x128xi1>
    %36 = vector.broadcast %35 : vector<1x128xi1> to vector<8x128xi1>
    %37 = vector.broadcast %cst_17 : f32 to vector<8x128xf32>
    %38 = arith.select %36, %34, %37 : vector<8x128xi1>, vector<8x128xf32>
    %c127_i32_18 = arith.constant 127 : i32
    %39 = tpu.dynamic_rotate %33 by %c127_i32_18 dim 1 : vector<8x128xf32>, i32 -> vector<8x128xf32>
    %cst_19 = arith.constant 0.000000e+00 : f32
    %40 = vector.shape_cast %22 : vector<1x128xi1> to vector<1x128xi1>
    %41 = vector.broadcast %40 : vector<1x128xi1> to vector<8x128xi1>
    %42 = vector.broadcast %cst_19 : f32 to vector<8x128xf32>
    %43 = arith.select %41, %39, %42 : vector<8x128xi1>, vector<8x128xf32>
    %44 = vector.extract_strided_slice %25 {offsets = [0, 0], sizes = [8, 1], strides = [1, 1]} : vector<8x3xf32> to vector<8x1xf32>
    %45 = vector.broadcast %44 : vector<8x1xf32> to vector<8x128xf32>
    %46 = arith.mulf %45, %38 : vector<8x128xf32>
    %47 = vector.extract_strided_slice %25 {offsets = [0, 1], sizes = [8, 1], strides = [1, 1]} : vector<8x3xf32> to vector<8x1xf32>
    %48 = vector.broadcast %47 : vector<8x1xf32> to vector<8x128xf32>
    %49 = arith.mulf %48, %33 : vector<8x128xf32>
    %50 = arith.addf %46, %49 : vector<8x128xf32>
    %51 = vector.extract_strided_slice %25 {offsets = [0, 2], sizes = [8, 1], strides = [1, 1]} : vector<8x3xf32> to vector<8x1xf32>
    %52 = vector.broadcast %51 : vector<8x1xf32> to vector<8x128xf32>
    %53 = arith.mulf %52, %43 : vector<8x128xf32>
    %54 = arith.addf %50, %53 : vector<8x128xf32>
    %c8_20 = arith.constant 8 : index
    %c0_21 = arith.constant 0 : index
    %55 = vector.load %arg5[%c8_20, %c0_21] : memref<64x1xf32, #tpu.memory_space<vmem>>, vector<8x1xf32>
    %56 = vector.broadcast %55 : vector<8x1xf32> to vector<8x128xf32>
    %57 = arith.addf %54, %56 : vector<8x128xf32>
    %cst_22 = arith.constant 0.00999999977 : f32
    %58 = vector.broadcast %cst_22 : f32 to vector<8x128xf32>
    %59 = arith.mulf %58, %57 : vector<8x128xf32>
    %60 = arith.maximumf %57, %59 : vector<8x128xf32>
    %61 = tpu.concatenate %33, %60 in 0 : vector<8x128xf32>, vector<8x128xf32> -> vector<16x128xf32>
    %c0_23 = arith.constant 0 : index
    %62 = memref.load %arg8[%c0_23] : memref<3xf32, #tpu.memory_space<smem>>
    %c1 = arith.constant 1 : index
    %63 = memref.load %arg8[%c1] : memref<3xf32, #tpu.memory_space<smem>>
    %c2 = arith.constant 2 : index
    %64 = memref.load %arg8[%c2] : memref<3xf32, #tpu.memory_space<smem>>
    %cst_24 = arith.constant dense<0.000000e+00> : vector<16xf32>
    %65 = vector.multi_reduction <add>, %61, %cst_24 [1] : vector<16x128xf32> to vector<16xf32>
    %66 = vector.shape_cast %65 : vector<16xf32> to vector<16x1xf32>
    %cst_25 = arith.constant 7.812500e-03 : f32
    %67 = vector.broadcast %cst_25 : f32 to vector<16x1xf32>
    %68 = arith.mulf %66, %67 : vector<16x1xf32>
    %cst_26 = arith.constant 0.000000e+00 : f32
    %69 = vector.broadcast %cst_26 : f32 to vector<1x1xf32>
    %70 = vector.extract_strided_slice %68 {offsets = [0, 0], sizes = [15, 1], strides = [1, 1]} : vector<16x1xf32> to vector<15x1xf32>
    %71 = tpu.concatenate %69, %70 in 0 : vector<1x1xf32>, vector<15x1xf32> -> vector<16x1xf32>
    %72 = vector.extract_strided_slice %68 {offsets = [1, 0], sizes = [15, 1], strides = [1, 1]} : vector<16x1xf32> to vector<15x1xf32>
    %73 = tpu.concatenate %72, %69 in 0 : vector<15x1xf32>, vector<1x1xf32> -> vector<16x1xf32>
    %74 = vector.broadcast %62 : f32 to vector<16x1xf32>
    %75 = arith.mulf %74, %71 : vector<16x1xf32>
    %76 = vector.broadcast %63 : f32 to vector<16x1xf32>
    %77 = arith.mulf %76, %68 : vector<16x1xf32>
    %78 = arith.addf %75, %77 : vector<16x1xf32>
    %79 = vector.broadcast %64 : f32 to vector<16x1xf32>
    %80 = arith.mulf %79, %73 : vector<16x1xf32>
    %81 = arith.addf %78, %80 : vector<16x1xf32>
    %82 = arith.negf %81 : vector<16x1xf32>
    %83 = math.exp %82 : vector<16x1xf32>
    %cst_27 = arith.constant 1.000000e+00 : f32
    %84 = vector.broadcast %cst_27 : f32 to vector<16x1xf32>
    %85 = arith.addf %84, %83 : vector<16x1xf32>
    %86 = arith.divf %84, %85 : vector<16x1xf32>
    %87 = vector.broadcast %86 : vector<16x1xf32> to vector<16x128xf32>
    %88 = arith.mulf %61, %87 : vector<16x128xf32>
    %c0_28 = arith.constant 0 : index
    %c0_29 = arith.constant 0 : index
    %89 = vector.load %arg3[%c0_28, %c0_29] : memref<8x16xf32, #tpu.memory_space<vmem>>, vector<8x16xf32>
    %cst_30 = arith.constant dense<0.000000e+00> : vector<8x128xf32>
    %90 = tpu.matmul %89, %88, %cst_30 {dimension_numbers = #tpu.dot_dimension_numbers<[1], [0], [0], [1], [0, 0, 1, 1], [], []>} : vector<8x16xf32>, vector<16x128xf32>, vector<8x128xf32> -> vector<8x128xf32>
    %c16 = arith.constant 16 : index
    %c0_31 = arith.constant 0 : index
    %91 = vector.load %arg5[%c16, %c0_31] : memref<64x1xf32, #tpu.memory_space<vmem>>, vector<8x1xf32>
    %92 = vector.broadcast %91 : vector<8x1xf32> to vector<8x128xf32>
    %93 = arith.addf %90, %92 : vector<8x128xf32>
    %c1_i32_32 = arith.constant 1 : i32
    %94 = tpu.dynamic_rotate %93 by %c1_i32_32 dim 1 : vector<8x128xf32>, i32 -> vector<8x128xf32>
    %cst_33 = arith.constant 0.000000e+00 : f32
    %95 = vector.shape_cast %20 : vector<1x128xi1> to vector<1x128xi1>
    %96 = vector.broadcast %95 : vector<1x128xi1> to vector<8x128xi1>
    %97 = vector.broadcast %cst_33 : f32 to vector<8x128xf32>
    %98 = arith.select %96, %94, %97 : vector<8x128xi1>, vector<8x128xf32>
    %c127_i32_34 = arith.constant 127 : i32
    %99 = tpu.dynamic_rotate %93 by %c127_i32_34 dim 1 : vector<8x128xf32>, i32 -> vector<8x128xf32>
    %cst_35 = arith.constant 0.000000e+00 : f32
    %100 = vector.shape_cast %22 : vector<1x128xi1> to vector<1x128xi1>
    %101 = vector.broadcast %100 : vector<1x128xi1> to vector<8x128xi1>
    %102 = vector.broadcast %cst_35 : f32 to vector<8x128xf32>
    %103 = arith.select %101, %99, %102 : vector<8x128xi1>, vector<8x128xf32>
    %104 = vector.extract_strided_slice %26 {offsets = [0, 0], sizes = [8, 1], strides = [1, 1]} : vector<8x3xf32> to vector<8x1xf32>
    %105 = vector.broadcast %104 : vector<8x1xf32> to vector<8x128xf32>
    %106 = arith.mulf %105, %98 : vector<8x128xf32>
    %107 = vector.extract_strided_slice %26 {offsets = [0, 1], sizes = [8, 1], strides = [1, 1]} : vector<8x3xf32> to vector<8x1xf32>
    %108 = vector.broadcast %107 : vector<8x1xf32> to vector<8x128xf32>
    %109 = arith.mulf %108, %93 : vector<8x128xf32>
    %110 = arith.addf %106, %109 : vector<8x128xf32>
    %111 = vector.extract_strided_slice %26 {offsets = [0, 2], sizes = [8, 1], strides = [1, 1]} : vector<8x3xf32> to vector<8x1xf32>
    %112 = vector.broadcast %111 : vector<8x1xf32> to vector<8x128xf32>
    %113 = arith.mulf %112, %103 : vector<8x128xf32>
    %114 = arith.addf %110, %113 : vector<8x128xf32>
    %c24 = arith.constant 24 : index
    %c0_36 = arith.constant 0 : index
    %115 = vector.load %arg5[%c24, %c0_36] : memref<64x1xf32, #tpu.memory_space<vmem>>, vector<8x1xf32>
    %116 = vector.broadcast %115 : vector<8x1xf32> to vector<8x128xf32>
    %117 = arith.addf %114, %116 : vector<8x128xf32>
    %118 = tpu.concatenate %93, %117 in 0 : vector<8x128xf32>, vector<8x128xf32> -> vector<16x128xf32>
    %c32 = arith.constant 32 : index
    %c0_37 = arith.constant 0 : index
    %119 = vector.load %arg5[%c32, %c0_37] : memref<64x1xf32, #tpu.memory_space<vmem>>, vector<8x1xf32>
    %120 = vector.broadcast %119 : vector<8x1xf32> to vector<8x128xf32>
    %121 = arith.mulf %1, %120 : vector<8x128xf32>
    %c40 = arith.constant 40 : index
    %c0_38 = arith.constant 0 : index
    %122 = vector.load %arg5[%c40, %c0_38] : memref<64x1xf32, #tpu.memory_space<vmem>>, vector<8x1xf32>
    %123 = vector.broadcast %122 : vector<8x1xf32> to vector<8x128xf32>
    %124 = arith.addf %121, %123 : vector<8x128xf32>
    %cst_39 = arith.constant 0.00999999977 : f32
    %125 = vector.broadcast %cst_39 : f32 to vector<8x128xf32>
    %126 = arith.mulf %125, %124 : vector<8x128xf32>
    %127 = arith.maximumf %124, %126 : vector<8x128xf32>
    %cst_40 = arith.constant dense<0.000000e+00> : vector<16x128xf32>
    %128 = tpu.matmul %24, %127, %cst_40 {dimension_numbers = #tpu.dot_dimension_numbers<[1], [0], [0], [1], [0, 0, 1, 1], [], []>} : vector<16x8xf32>, vector<8x128xf32>, vector<16x128xf32> -> vector<16x128xf32>
    %c48 = arith.constant 48 : index
    %c0_41 = arith.constant 0 : index
    %129 = vector.load %arg5[%c48, %c0_41] : memref<64x1xf32, #tpu.memory_space<vmem>>, vector<16x1xf32>
    %130 = vector.broadcast %129 : vector<16x1xf32> to vector<16x128xf32>
    %131 = arith.addf %128, %130 : vector<16x128xf32>
    %cst_42 = arith.constant 0.00999999977 : f32
    %132 = vector.broadcast %cst_42 : f32 to vector<16x128xf32>
    %133 = arith.mulf %132, %131 : vector<16x128xf32>
    %134 = arith.maximumf %131, %133 : vector<16x128xf32>
    %135 = arith.addf %118, %134 : vector<16x128xf32>
    %c0_43 = arith.constant 0 : index
    %c0_44 = arith.constant 0 : index
    %c0_45 = arith.constant 0 : index
    %136 = vector.load %arg9[%c0_43, %c0_44, %c0_45] : memref<1x16x128xf32, #tpu.memory_space<vmem>>, vector<1x16x128xf32>
    %137 = vector.shape_cast %136 : vector<1x16x128xf32> to vector<16x128xf32>
    %138 = vector.shape_cast %135 : vector<16x128xf32> to vector<1x16x128xf32>
    tpu.vector_store %arg9[%c0_43, %c0_44, %c0_45], %138 {strides = array<i32>} : memref<1x16x128xf32, #tpu.memory_space<vmem>>, vector<1x16x128xf32>,
    return
  }
  func.func @transform_0(%arg0: i32) -> (i32, i32, i32) {
    %c0_i32 = arith.constant 0 : i32
    %c0_i32_0 = arith.constant 0 : i32
    %c0_i32_1 = arith.constant 0 : i32
    return %arg0, %c0_i32, %c0_i32_0 : i32, i32, i32
  }
  func.func @transform_1(%arg0: i32) -> (i32, i32) {
    %c0_i32 = arith.constant 0 : i32
    %c0_i32_0 = arith.constant 0 : i32
    %c0_i32_1 = arith.constant 0 : i32
    return %c0_i32, %c0_i32_0 : i32, i32
  }
  func.func @transform_2(%arg0: i32) -> (i32, i32) {
    %c0_i32 = arith.constant 0 : i32
    %c0_i32_0 = arith.constant 0 : i32
    %c0_i32_1 = arith.constant 0 : i32
    return %c0_i32, %c0_i32_0 : i32, i32
  }
  func.func @transform_3(%arg0: i32) -> (i32, i32) {
    %c0_i32 = arith.constant 0 : i32
    %c0_i32_0 = arith.constant 0 : i32
    %c0_i32_1 = arith.constant 0 : i32
    return %c0_i32, %c0_i32_0 : i32, i32
  }
  func.func @transform_4(%arg0: i32) -> (i32, i32) {
    %c0_i32 = arith.constant 0 : i32
    %c0_i32_0 = arith.constant 0 : i32
    %c0_i32_1 = arith.constant 0 : i32
    return %c0_i32, %c0_i32_0 : i32, i32
  }
  func.func @transform_5(%arg0: i32) -> (i32, i32) {
    %c0_i32 = arith.constant 0 : i32
    %c0_i32_0 = arith.constant 0 : i32
    %c0_i32_1 = arith.constant 0 : i32
    return %c0_i32, %c0_i32_0 : i32, i32
  }
  func.func @transform_6(%arg0: i32) -> (i32, i32) {
    %c0_i32 = arith.constant 0 : i32
    %c0_i32_0 = arith.constant 0 : i32
    %c0_i32_1 = arith.constant 0 : i32
    return %c0_i32, %c0_i32_0 : i32, i32
  }
  func.func @transform_7(%arg0: i32) -> i32 {
    %c0_i32 = arith.constant 0 : i32
    %c0_i32_0 = arith.constant 0 : i32
    return %c0_i32 : i32
  }
  func.func @transform_8(%arg0: i32) -> (i32, i32, i32) {
    %c0_i32 = arith.constant 0 : i32
    %c0_i32_0 = arith.constant 0 : i32
    %c0_i32_1 = arith.constant 0 : i32
    return %arg0, %c0_i32, %c0_i32_0 : i32, i32, i32
  }
}

</mosaic_0001>

<bundles_post_ra>
// kernel: tpu_custom_call.1
= control target key start
LH: loop header
LB: loop body
LE: loop exit
PB: predicated region body
PF: predicated region fallthrough
CT: control target
= control target key end

     0   :  { %13 = vsyncpa [#allocation4], 0  ;;  %s1124_s0 = inlined_call_operand.vmem [shape: f32[2,8,128], index: 0, kind: input, shape index: {}]   ;;  %s1125_s1 = inlined_call_operand.vmem [shape: f32[24,8], index: 1, kind: input, shape index: {}]   ;;  %s1126_s2 = inlined_call_operand.vmem [shape: f32[8,16], index: 2, kind: input, shape index: {}]   ;;  %s1127_s3 = inlined_call_operand.vmem [shape: f32[16,3], index: 3, kind: input, shape index: {}]   ;;  %s1128_s4 = inlined_call_operand.vmem [shape: f32[64,1], index: 4, kind: input, shape index: {}]   ;;  %s1129_s5 = inlined_call_operand.vmem [shape: f32[128,1], index: 5, kind: input, shape index: {}]   ;;  %s1130_s6 = inlined_call_operand.vmem [shape: f32[1,128], index: 6, kind: input, shape index: {}]   ;;  %s1131_s7 = inlined_call_operand.vmem [shape: f32[3], index: 7, kind: input, shape index: {}]   ;;  %s1132_s8 = inlined_call_operand.hbm [shape: f32[2,16,128], index: 8, kind: output, shape index: {}]  }
   0x1   :  { %14 = vsyncpa [#allocation3], 0 }
   0x2   :  { %16 = vsyncpa [#allocation3 + $0x1], 0  ;;  %s943_s27 = smov 0   ;;  %s945_s28 = smov 0  }
   0x3   :  { %s947_s29 = smov 0   ;;  %s949_s30 = smov 0  }
   0x4 LB: > { %s964_s5 = sadd.s32 4294967295, %s888_s30   ;;  %s711_s6 = sadd.s32 4294967294, %s888_s30   ;;  %s888_s30 = sphi %s949_s30, %s1138_s30   ;;  %s884_s29 = sphi %s947_s29, %s1137_s29   ;;  %s880_s28 = sphi %s945_s28, %s1136_s28   ;;  %s876_s27 = sphi %s943_s27, %s1135_s27  }
   0x5   : > { %s968_s9 = sadd.s32 1, %s888_s30   ;;  %s202_s10 = sadd.s32 1, %s884_s29 }
   0x6   : > { %s199_s11 = ssub.s32 %s888_s30, %s968_s9  ;;  %p212_p0 = scmp.ne.s32.totalorder %s884_s29, %s880_s28 }
   0x7   : > { %p200_p1 = scmp.eq.s32.totalorder %s199_s11, 0  ;;  %p213_p2 = scmp.eq.s32.totalorder %s964_s5, 1 }
   0x8   : > { %p218_p3 = scmp.ne.s32.totalorder %s880_s28, %s876_s27  ;;  %p219_p4 = scmp.eq.s32.totalorder %s711_s6, 1 }
   0x9   : > { %s979_s12 = scalar_select %p200_p1, %s884_s29, %s202_s10  }
   0xa   : > { %p981_p5 = por %p213_p2, %p212_p0  ;;  %p985_p6 = por %p219_p4, %p218_p3 }
   0xb   : > { %p712_p7 = scmp.ge.s32.totalorder %s888_s30, 1  ;;  %p226_p8 = scmp.lt.s32.totalorder %s888_s30, 3 }
   0xc   : > { %p748_p9 = scmp.eq.s32.totalorder %s964_s5, 0  ;;  %s256_s17 = sshll.u32 %s1131_s7, 4  ;;  %s257_s17 = int_to_ptr.vmem [resolvable:$true] %s256_s17 }
   0xd   : > { %p227_p10 = pnand %p712_p7, %p226_p8  ;;  %s890_s18 = smov [#allocation2]  }
   0xf   : > { %p740_p11 = pneg %p227_p10  ;;  %276 = sbr.rel (%p227_p10) target bundleno = 837 (0x345), region = 52 }
  0x11   : > { %p741_p12 = pnand %p748_p9, %p740_p11 }
  0x13   : > { %743 = dma.vmem_to_smem (!%p741_p12), %s257_s17, 16, %s890_s18, [#allocation4]  }
  0x14   : > { %867 = dma.done.wait (%p748_p9), [#allocation4], 16  }
  0x15   : > { %869 = vsyncadd (%p748_p9), [#allocation4], 4294967280 }
  0x16   : > { %283 = sfence }
  0x17   : > { %p311_p13 = scmp.lt.s32.totalorder %s964_s5, 1  ;;  %v335_v0 = vld [vmem:[%s1127_s3] sm:$0xff]  ;;  %v891_v2 = vmov 0   ;;  %vm343_vm0 = vcmask 64512   ;;  %v892_v5 = vmov 1   ;;  %v893_v6 = vmov 2  }
  0x18   : > { %v337_v1 = vld [vmem:[%s1128_s4] sm:$0xff]  ;;  %792 = vset.pattern.permute.xlu1 %v891_v2  ;;  %791 = vset.pattern.permute.xlu0 %v891_v2  ;;  %s894_s15 = smov 127   ;;  %s895_s16 = smov 1   ;;  %v397_v12 = vld [vmem:[%s1128_s4 + $0x8] sm:$0xff]  ;;  %v316_v16 = vlaneseq  ;;  %vm417_vm3 = vcmask 1040384   ;;  %vm424_vm4 = vcmask 1046528  }
  0x19   : > { %s312_s23 = scalar_select %p311_p13, %s964_s5, 1  ;;  %381 = vperm.xlu1 %792, %v335_v0   ;;  %340 = vperm.xlu0 %791, %v337_v1   ;;  %v332_v3 = vld [vmem:[%s1125_s1] sm:$0xff]  ;;  %v1030_v13 = vld [vmem:[%s1127_s3 + $0x8] sm:$0xff]  ;;  %vm501_vm13 = vcmask 130048  }
  0x1a   : > { %794 = vset.pattern.permute.xlu2 %v893_v6  ;;  %v1033_v17 = vand.u32 127, %v316_v16  ;;  %s406_s21 = sld [smem:[#allocation2]]  ;;  %s308_s11 = sand.u32 1, %s880_s28  }
  0x1b   : > { %s718_s24 = sshll.u32 %s312_s23, 3  ;;  %s720_s22 = sld [smem:[#allocation2 + $0x1]] }
  0x1c   : > { %s314_s6 = scalar_lea.vmem %s1124_s0, %s718_s24  ;;  %vm330_vm1 = vcmp.ne.s32.totalorder %v1033_v17, 0  ;;  %vm331_vm2 = vcmp.ne.s32.totalorder %v1033_v17, 127  ;;  %s721_s23 = sld [smem:[#allocation2 + $0x2]] }
  0x1d   : > { %v1011_v4 = vld [vmem:[%s314_s6] sm:$0xff]  ;;  %s717_s17 = sshll.u32 %s308_s11, 4  ;;  %s842_s6 = scalar_lea.hbm %s1132_s8, 32 }
  0x1e   : > { %362 = vmatpush.msra.mxu0 %v1011_v4 }
  0x1f   : > { %719 = vmatmul.msk.f32.vlgmr.msra.gmra.mxu0 %vm343_vm0, %v332_v3 }
  0x20   : > { %v431_v35 = vstv %s406_s21 }
  0x21   : > { %793 = vset.pattern.permute.xlu1 %v892_v5  ;;  %v434_v38 = vstv %s720_s22 }
  0x22   : > { %386 = vperm.xlu1 %793, %v335_v0   ;;  %v439_v42 = vstv %s721_s23 }
  0x2a   : > { %795 = vset.pattern.permute.xlu1 %v891_v2 }
  0x8b   : > { %v341_v7 = vpop.permute.xlu0 %340  ;;  %v382_v14 = vpop.permute.xlu1 %381 }
  0x94   : > { %v387_v18 = vpop.permute.xlu1 %386 }
  0x9c   : > { %v364_v8 = vpop.f32.mrf.mxu0 }
  0x9d   : > { %v365_v9 = vadd.f32 %v364_v8, %v341_v7 }
  0x9f   : > { %v367_v10 = vmul.f32 0.01, %v365_v9 }
  0xa1   : > { %v1017_v11 = vmax.f32 %v365_v9, %v367_v10 }
  0xa3   : > { %409 = vadd.xlane.f32.xlu1 %v1017_v11  ;;  %374 = vrot.lane.b32.xlu2 %v1017_v11, %s894_s15  ;;  %v389_v22 = vmul.f32 %v387_v18, %v1017_v11 }
  0xa4   : > { %369 = vrot.lane.b32.xlu0 %v1017_v11, %s895_s16 }
  0xab   : > { %392 = vperm.xlu2 %794, %v335_v0  }
  0xac   : > { %400 = vperm.xlu0 %791, %v397_v12  }
  0xbc   : > { %533 = vperm.xlu1 %795, %v1030_v13  }
  0xfd   : > { %v375_v15 = vpop.permute.xlu2 %374 }
  0xfe   : > { %v378_v24 = vsel %vm331_vm2, %v375_v15, 0.0 }
 0x105   : > { %v393_v20 = vpop.permute.xlu2 %392 }
 0x106   : > { %v395_v25 = vmul.f32 %v393_v20, %v378_v24 }
 0x116   : > { %v370_v19 = vpop.permute.xlu0 %369  ;;  %v410_v32 = vpop.xlane.xlu1 %409 }
 0x117   : > { %v373_v21 = vsel %vm330_vm1, %v370_v19, 0.0  ;;  %v413_v33 = vmul.f32 0.0078125, %v410_v32 }
 0x118   : > { %v384_v23 = vmul.f32 %v382_v14, %v373_v21 }
 0x119   : > { %v418_v34 = vrot.slane %v413_v33, 7  ;;  %v425_v41 = vrot.slane %v413_v33, 1  ;;  %v435_v45 = vmul.f32 %v434_v38, %v413_v33 }
 0x11a   : > { %v390_v26 = vadd.f32 %v389_v22, %v384_v23 }
 0x11b   : > { %v423_v36 = vsel %vm417_vm3, 0.0, %v418_v34 }
 0x11c   : > { %v396_v27 = vadd.f32 %v395_v25, %v390_v26  ;;  %v432_v40 = vmul.f32 %v431_v35, %v423_v36  ;;  %v556_v25 = vld [vmem:[%s1128_s4 + $0x20] sm:$0xff]  ;;  %v563_v26 = vld [vmem:[%s1128_s4 + $0x28] sm:$0xff] }
 0x11e   : > { %v401_v28 = vpop.permute.xlu0 %400  ;;  %v437_v49 = vadd.f32 %v435_v45, %v432_v40  ;;  %v573_v40 = vld [vmem:[%s1128_s4 + $0x38] sm:$0xff] }
 0x11f   : > { %v403_v29 = vadd.f32 %v401_v28, %v396_v27  ;;  %v495_v27 = vld [vmem:[%s1128_s4 + $0x10] sm:$0xff] }
 0x121   : > { %v404_v30 = vmul.f32 0.01, %v403_v29 }
 0x123   : > { %v1042_v31 = vmax.f32 %v403_v29, %v404_v30  ;;  %v572_v29 = vld [vmem:[%s1128_s4 + $0x30] sm:$0xff] }
 0x124   : > { %576 = vperm.xlu1 %795, %v572_v29  }
 0x125   : > { %411 = vadd.xlane.f32.xlu2 %v1042_v31 }
 0x13d   : > { %544 = vperm.xlu2 %794, %v1030_v13  }
 0x145   : > { %798 = vset.pattern.permute.xlu2 %v891_v2 }
 0x198   : > { %v412_v37 = vpop.xlane.xlu2 %411 }
 0x199   : > { %v414_v39 = vmul.f32 0.0078125, %v412_v37 }
 0x19b   : > { %v419_v43 = vrot.slane %v414_v39, 7  ;;  %v426_v44 = vrot.slane %v414_v39, 1  ;;  %v436_v51 = vmul.f32 %v434_v38, %v414_v39 }
 0x19d   : > { %v420_v46 = vsel %vm417_vm3, %v418_v34, %v419_v43  ;;  %v427_v47 = vsel %vm424_vm4, %v425_v41, %v426_v44  ;;  %v430_v48 = vsel %vm424_vm4, %v426_v44, 0.0  ;;  %v549_v41 = vld [vmem:[%s1128_s4 + $0x18] sm:$0xff] }
 0x19e   : > { %v433_v50 = vmul.f32 %v431_v35, %v420_v46  ;;  %v440_v52 = vmul.f32 %v439_v42, %v427_v47  ;;  %v441_v54 = vmul.f32 %v439_v42, %v430_v48  ;;  %v534_v42 = vpop.permute.xlu1 %533 }
 0x1a0   : > { %v438_v53 = vadd.f32 %v436_v51, %v433_v50  ;;  %v442_v55 = vadd.f32 %v440_v52, %v437_v49  ;;  %v545_v49 = vpop.permute.xlu2 %544 }
 0x1a2   : > { %v443_v56 = vadd.f32 %v441_v54, %v438_v53  ;;  %v722_v57 = vmul.f32 -1.442695, %v442_v55 }
 0x1a4   : > { %799 = vpow2.f32 %v722_v57  ;;  %v723_v58 = vmul.f32 -1.442695, %v443_v56 }
 0x1a6   : > { %801 = vpow2.f32 %v723_v58  ;;  %v577_v43 = vpop.permute.xlu1 %576 }
 0x1aa   : > { %v800_v59 = vpop.eup %799 }
 0x1ab   : > { %v450_v60 = vadd.f32 1.0, %v800_v59 }
 0x1ac   : > { %v802_v61 = vpop.eup %801 }
 0x1ad   : > { %v451_v62 = vadd.f32 1.0, %v802_v61  ;;  %803 = vrcp.f32 %v450_v60  ;;  %v463_v20 = vand.u32 2147483648, %v450_v60  ;;  %vm457_vm10 = vweird.f32 %v450_v60 }
 0x1ae   : > { %v461_v21 = vand.u32 2147483647, %v450_v60 }
 0x1af   : > { %805 = vrcp.f32 %v451_v62  ;;  %v478_v8 = vand.u32 2147483648, %v451_v62  ;;  %v476_v10 = vand.u32 2147483647, %v451_v62  ;;  %vm472_vm6 = vweird.f32 %v451_v62 }
 0x1b0   : > { %v464_v23 = vor.u32 1.1754944e-38, %v463_v20  ;;  %vm462_vm12 = vcmp.eq.f32.partialorder %v461_v21, 8.507059e+37 }
 0x1b1   : > { %v479_v15 = vor.u32 1.1754944e-38, %v478_v8  ;;  %vm477_vm8 = vcmp.eq.f32.partialorder %v476_v10, 8.507059e+37 }
 0x1b3   : > { %v804_v63 = vpop.eup %803 }
 0x1b4   : > { %v453_v0 = vmul.f32 %v804_v63, %v450_v60  ;;  %vm458_vm9 = vweird.f32 %v804_v63 }
 0x1b5   : > { %v806_v1 = vpop.eup %805  ;;  %vm459_vm11 = vmor %vm457_vm10, %vm458_vm9 }
 0x1b6   : > { %v468_v3 = vmul.f32 %v806_v1, %v451_v62  ;;  %v454_v7 = vsub.f32 1.0, %v453_v0  ;;  %vm473_vm5 = vweird.f32 %v806_v1 }
 0x1b7   : > { %vm474_vm7 = vmor %vm472_vm6, %vm473_vm5 }
 0x1b8   : > { %v469_v6 = vsub.f32 1.0, %v468_v3  ;;  %v455_v14 = vmul.f32 %v804_v63, %v454_v7 }
 0x1ba   : > { %v470_v9 = vmul.f32 %v806_v1, %v469_v6  ;;  %v456_v19 = vadd.f32 %v804_v63, %v455_v14 }
 0x1bc   : > { %v471_v12 = vadd.f32 %v806_v1, %v470_v9  ;;  %v460_v22 = vsel %vm459_vm11, %v804_v63, %v456_v19 }
 0x1bd   : > { %v465_v24 = vsel %vm462_vm12, %v464_v23, %v460_v22 }
 0x1be   : > { %v475_v16 = vsel %vm474_vm7, %v806_v1, %v471_v12 }
 0x1bf   : > { %v480_v18 = vsel %vm477_vm8, %v479_v15, %v475_v16 }
 0x1c0   : > { %489 = vperm.xlu0 %791, %v480_v18  }
 0x1c8   : > { %484 = vperm.xlu0 %791, %v465_v24  }
 0x1d0   : > { %559 = vperm.xlu0 %791, %v556_v25  }
 0x1d8   : > { %566 = vperm.xlu0 %791, %v563_v26  }
 0x1e0   : > { %498 = vperm.xlu0 %791, %v495_v27  }
 0x1e8   : > { %796 = vset.pattern.permute.xlu0 %v892_v5  ;;  %v494_v5 = vld [vmem:[%s1126_s2] sm:$0xff] }
 0x1e9   : > { %538 = vperm.xlu0 %796, %v1030_v13  }
 0x1f1   : > { %797 = vset.pattern.permute.xlu0 %v891_v2 }
 0x232   : > { %v490_v28 = vpop.permute.xlu0 %489 }
 0x233   : > { %v493_v30 = vmul.f32 %v490_v28, %v1042_v31  ;;  %v333_v31 = vld [vmem:[%s1125_s1 + $0x8] sm:$0xff] }
 0x235   : > { %519 = vmatpush.msra.mxu1 %v493_v30 }
 0x23a   : > { %v485_v32 = vpop.permute.xlu0 %484 }
 0x23b   : > { %v492_v33 = vmul.f32 %v485_v32, %v1017_v11  ;;  %v334_v11 = vld [vmem:[%s1125_s1 + $0x10] sm:$0xff] }
 0x23d   : > { %520 = vmatpush.msra.mxu1 %v492_v33 }
 0x23e   : > { %724 = vmatmul.msk.f32.vlgmr.msra.gmra.mxu1 %vm501_vm13, %v494_v5 }
 0x242   : > { %v560_v2 = vpop.permute.xlu0 %559 }
 0x243   : > { %v562_v13 = vmul.f32 %v560_v2, %v1011_v4 }
 0x24a   : > { %v567_v34 = vpop.permute.xlu0 %566 }
 0x24b   : > { %v569_v35 = vadd.f32 %v567_v34, %v562_v13 }
 0x24d   : > { %v570_v36 = vmul.f32 0.01, %v569_v35 }
 0x24f   : > { %v571_v37 = vmax.f32 %v569_v35, %v570_v36 }
 0x251   : > { %605 = vmatpush.msra.mxu2 %v571_v37  ;;  %733 = vmatpush.msra.mxu3 %v571_v37 }
 0x252   : > { %725 = vmatmul.msk.f32.vlgmr.msra.gmra.mxu2 %vm343_vm0, %v333_v31  ;;  %726 = vmatmul.msk.f32.vlgmr.msra.gmra.mxu3 %vm343_vm0, %v334_v11  ;;  %v499_v4 = vpop.permute.xlu0 %498 }
 0x25b   : > { %v539_v50 = vpop.permute.xlu0 %538 }
 0x2bb   : > { %v522_v38 = vpop.f32.mrf.mxu1 }
 0x2bc   : > { %v523_v39 = vadd.f32 %v522_v38, %v499_v4 }
 0x2be   : > { %528 = vrot.lane.b32.xlu0 %v523_v39, %s894_s15  ;;  %525 = vrot.lane.b32.xlu2 %v523_v39, %s895_s16  ;;  %s310_s15 = scalar_lea.vmem [#allocation5], %s717_s17  ;;  %v541_v56 = vmul.f32 %v539_v50, %v523_v39  ;;  %s732_s16 = sshll.u32 %s964_s5, 4 }
 0x2bf   : > { %s633_s20 = scalar_lea.hbm %s1132_s8, %s732_s16  ;;  %s634_s21 = sshll.u32 %s310_s15, 4  ;;  %s635_s21 = int_to_ptr.vmem [resolvable:$true] %s634_s21 }
 0x2c0   : > { %s636_s22 = sshll.u32 %s633_s20, 4  ;;  %s622_s5 = scalar_lea.sflag [#allocation3], %s308_s11  ;;  %s637_s22 = int_to_ptr.hbm [resolvable:$true] %s636_s22 }
 0x2c1   : > { %s836_s23 = sshra.s32 %s637_s22, 4  ;;  %s837_s23 = int_to_ptr.hbm [resolvable:$true] %s836_s23 }
 0x2c2   : > { %s838_s24 = scalar_lea.hbm %s837_s23, 16  ;;  %p843_p3 = scmp.lt.s32.totalorder %s837_s23, %s1132_s8 }
 0x2c3   : > { %p839_p0 = scmp.ne.s32.totalorder %s837_s23, %s838_s24  ;;  %p844_p4 = scmp.lt.s32.totalorder %s842_s6, %s838_s24 }
 0x2c5   : > { %p840_p1 = pnand %p839_p0, %p981_p5  ;;  %p845_p7 = por %p844_p4, %p843_p3 }
 0x2c6   : > { %581 = vperm.xlu0 %797, %v573_v40   ;;  %552 = vperm.xlu2 %798, %v549_v41  }
 0x2c7   : > { %p841_p2 = pneg %p840_p1 }
 0x2c9   : > { %p846_p8 = pnand %p845_p7, %p841_p2 }
 0x2d5   : > { %v607_v44 = vpop.f32.mrf.mxu2  ;;  %v610_v58 = vpop.f32.mrf.mxu3 }
 0x2d6   : > { %v608_v45 = vadd.f32 %v607_v44, %v577_v43 }
 0x2d8   : > { %v613_v46 = vmul.f32 0.01, %v608_v45 }
 0x2da   : > { %v615_v47 = vmax.f32 %v608_v45, %v613_v46 }
 0x2dc   : > { %v617_v48 = vadd.f32 %v615_v47, %v523_v39 }
 0x2de   : > { %619 = vst [vmem:[%s310_s15] sm:$0xff] %v617_v48 }
 0x318   : > { %v526_v51 = vpop.permute.xlu2 %525 }
 0x319   : > { %v527_v52 = vsel %vm330_vm1, %v526_v51, 0.0 }
 0x31a   : > { %v536_v55 = vmul.f32 %v534_v42, %v527_v52 }
 0x31c   : > { %v542_v59 = vadd.f32 %v541_v56, %v536_v55 }
 0x320   : > { %v553_v63 = vpop.permute.xlu2 %552 }
 0x330   : > { %v529_v53 = vpop.permute.xlu0 %528 }
 0x331   : > { %v530_v54 = vsel %vm331_vm2, %v529_v53, 0.0 }
 0x332   : > { %v547_v57 = vmul.f32 %v545_v49, %v530_v54 }
 0x334   : > { %v548_v61 = vadd.f32 %v547_v57, %v542_v59 }
 0x336   : > { %v555_v17 = vadd.f32 %v553_v63, %v548_v61 }
 0x338   : > { %v582_v60 = vpop.permute.xlu0 %581 }
 0x339   : > { %v611_v62 = vadd.f32 %v610_v58, %v582_v60 }
 0x33b   : > { %v614_v0 = vmul.f32 0.01, %v611_v62 }
 0x33d   : > { %v616_v1 = vmax.f32 %v611_v62, %v614_v0 }
 0x33f   : > { %v618_v3 = vadd.f32 %v616_v1, %v555_v17 }
 0x341   : > { %620 = vst [vmem:[%s310_s15 + $0x8] sm:$0xff] %v618_v3 }
 0x342   : > { %849 = shalt.err (!%p846_p8)
}
 0x343   : > { %s896_s11 = smov 128   ;;  %s897_s15 = smov 8  }
 0x344   : > { %738 = dma.vmem_to_hbm [thread:$0]  (%p981_p5), %s635_s21, 256, %s637_s22, %s622_s5, %s896_s11, %s896_s11, %s897_s15  }
 0x345 PF: > { %p750_p9 = scmp.ge.s32.totalorder %s888_s30, 2  ;;  %s651_s16 = sand.u32 1, %s876_s27  }
 0x346   : > { %s652_s18 = scalar_lea.sflag [#allocation3], %s651_s16 }
 0x347   : > { %p745_p10 = pnand %p750_p9, %p985_p6 }
 0x349   : > { %p746_p11 = pneg %p745_p10 }
 0x34b   : > { %871 = dma.done.wait (%p746_p11), %s652_s18, 256  }
 0x34c   : > { %873 = vsyncadd (%p746_p11), %s652_s18, 4294967040  ;;  %p19_p12 = scmp.ge.s32.totalorder %s968_s9, 4   ;;  %s1135_s27 = smov %s880_s28 }
 0x34d   : > { %s1136_s28 = smov %s884_s29  ;;  %s1137_s29 = smov %s979_s12 }
 0x34e   : > { %s1138_s30 = smov %s968_s9  ;;  %21 = sbr.rel (!%p19_p12) target bundleno = 4 (0x4), region = 92 }
 0x353   :  { %658 = vsyncpa [#allocation3], 1 }
 0x354   :  { %660 = vsyncpa [#allocation3 + $0x1], 1 }
 0x355   :  { %661 = vsyncpa [#allocation4], 1 }
 0x356   :  { %663 = vsyncpa [#allocation4 + $0x1], 1 }

</bundles_post_ra>
